<compile_context>
chip_gen: v5e
topology: v5e:2x2
jax: 0.10.0
libtpu: 0.0.40
codegen_flags: <defaults>
</compile_context>

<pallas_src>
import functools

import jax
import jax.numpy as jnp
from jax.experimental import pallas as pl
from jax.experimental.pallas import tpu as pltpu

LANE = 128           # feature dims padded to multiples of the lane width
BATCH_GRAN = 16      # batch-tile granularity (bf16-friendly sublane multiple)
MAX_BATCH_TILE = 512
_NEG_BIG = -1e30     # folded softmax mask for padded output columns


def _round_up(x, m):
    return ((x + m - 1) // m) * m


def _cdiv(a, b):
    return -(-a // b)


# ----------------------------- fused Pallas kernel -----------------------------

def _mlp_fused_kernel(*refs, num_layers, acts, emit_all):
    """refs = (x, w0, b0, w1, b1, ..., out0?, ..., out_last) — feature dims padded."""
    n_in = 1 + 2 * num_layers
    x_ref = refs[0]
    w_refs = [refs[1 + 2 * i] for i in range(num_layers)]
    b_refs = [refs[2 + 2 * i] for i in range(num_layers)]
    out_refs = refs[n_in:]

    # Activation stays VMEM/vreg-resident between layers (no HBM round-trips).
    h = x_ref[...]                                           # bf16
    for i in range(num_layers):
        # bf16 x bf16 -> f32 accumulate on the MXU.
        acc = jnp.dot(h, w_refs[i][...], preferred_element_type=jnp.float32)
        acc = acc + b_refs[i][...]
        act = acts[i]
        if act == "relu":
            acc = jnp.maximum(acc, 0.0)
        elif act == "softmax":
            # Padded columns carry a -1e30 bias (folded at prepare time), so
            # they fall out of max/sum with no in-kernel iota/where mask.
            m = jnp.max(acc, axis=-1, keepdims=True)
            e = jnp.exp(acc - m)                             # EUP
            s = jnp.sum(e, axis=-1, keepdims=True)           # XLU
            acc = e * pl.reciprocal(s, approx=True)          # EUP vrcp (free slot)
        elif act == "none":
            pass
        else:
            raise ValueError(f"unknown activation: {act}")

        if i == num_layers - 1:
            out_refs[-1][...] = acc.astype(out_refs[-1].dtype)
        else:
            h = acc.astype(jnp.bfloat16)                     # next layer's MXU input
            if emit_all:
                out_refs[i][...] = h                         # bf16 writeback


# ----------------------------- parameter handling ------------------------------

def init_params(key, sizes):
    """PyTorch nn.Linear-style init: U(-1/sqrt(fan_in), 1/sqrt(fan_in)); w is (out, in)."""
    params = []
    for i in range(len(sizes) - 1):
        key, kw, kb = jax.random.split(key, 3)
        fan_in, fan_out = sizes[i], sizes[i + 1]
        bound = 1.0 / jnp.sqrt(jnp.float32(fan_in))
        w = jax.random.uniform(kw, (fan_out, fan_in), jnp.float32, -bound, bound)
        b = jax.random.uniform(kb, (fan_out,), jnp.float32, -bound, bound)
        params.append((w, b))
    return params


def prepare_params(params, last_act="softmax"):
    """One-time prep: transpose + pad feature dims to 128, weights -> bf16.

    If the final activation is softmax, padded columns of the LAST layer's bias
    are set to -1e30 so they exp() to exactly 0 (softmax mask folded into bias).
    """
    wts, bs = [], []
    num_layers = len(params)
    for idx, (w, b) in enumerate(params):
        fan_out, fan_in = w.shape
        pin, pout = _round_up(fan_in, LANE), _round_up(fan_out, LANE)
        w_t = (jnp.zeros((pin, pout), jnp.bfloat16)
               .at[:fan_in, :fan_out].set(w.T.astype(jnp.bfloat16)))
        pad_fill = 0.0
        if idx == num_layers - 1 and last_act == "softmax" and pout > fan_out:
            pad_fill = _NEG_BIG
        b2 = jnp.full((1, pout), pad_fill, jnp.float32).at[0, :fan_out].set(b)
        wts.append(w_t)
        bs.append(b2)
    return tuple(wts), tuple(bs)


# --------------------------------- forward -------------------------------------

@functools.partial(jax.jit,
                   static_argnames=("sizes", "last_act", "return_all_activations"))
def n_layer_perceptron(wts, bs, x, *, sizes, last_act="softmax",
                       return_all_activations=False):
    """Fused forward pass of NLayerPerceptron (dropout=False)."""
    num_layers = len(sizes) - 1
    assert len(wts) == num_layers and len(bs) == num_layers
    B = x.shape[0]
    pad = [_round_up(s, LANE) for s in sizes]

    # Batch tiling: >=2 grid steps whenever B > BATCH_GRAN so both v7x
    # TensorCores get work, and tb ~= cdiv(B, n_tiles) keeps round-up waste
    # below one tile (no ~2x batch padding for awkward B).
    if B <= BATCH_GRAN:
        n_tiles = 1
    else:
        n_tiles = max(2, _cdiv(B, MAX_BATCH_TILE))
    tb = _round_up(_cdiv(B, n_tiles), BATCH_GRAN)
    b_pad = _round_up(B, tb)
    grid = b_pad // tb

    x_pad = jnp.pad(x, ((0, b_pad - B), (0, pad[0] - sizes[0]))).astype(jnp.bfloat16)

    acts = tuple(["relu"] * (num_layers - 1) +
                 [last_act if last_act is not None else "none"])
    emit_all = bool(return_all_activations)

    # x streams per batch tile (default double-buffering); weights/biases are
    # pinned in VMEM via a constant block index and single-buffered.
    resident = pl.Buffered(1)
    in_specs = [pl.BlockSpec((tb, pad[0]), lambda i: (i, 0))]
    operands = [x_pad]
    for l in range(num_layers):
        in_specs.append(pl.BlockSpec((pad[l], pad[l + 1]), lambda i: (0, 0),
                                     pipeline_mode=resident))
        in_specs.append(pl.BlockSpec((1, pad[l + 1]), lambda i: (0, 0),
                                     pipeline_mode=resident))
        operands.append(wts[l])
        operands.append(bs[l])
    # TODO(synk): if any single padded weight grows beyond ~1/3 of v7x's 64 MiB
    # VMEM, stop pinning it and stream K/N tiles with an inner pltpu.emit_pipeline.

    if emit_all:
        out_dtypes = [jnp.bfloat16] * (num_layers - 1) + [jnp.float32]
        out_shape = tuple(jax.ShapeDtypeStruct((b_pad, pad[l + 1]), out_dtypes[l])
                          for l in range(num_layers))
        out_specs = tuple(pl.BlockSpec((tb, pad[l + 1]), lambda i: (i, 0))
                          for l in range(num_layers))
    else:
        out_shape = jax.ShapeDtypeStruct((b_pad, pad[-1]), jnp.float32)
        out_specs = pl.BlockSpec((tb, pad[-1]), lambda i: (i, 0))

    # Explicit VMEM budget (bf16 weights, single-buffered; double-buffered I/O
    # tiles; one f32 live activation) instead of the 16/32 MiB scoped defaults.
    w_bytes = sum(pad[l] * pad[l + 1] for l in range(num_layers)) * 2   # bf16
    b_bytes = sum(pad[1:]) * 4
    x_tile_bytes = 2 * tb * pad[0] * 2
    if emit_all:
        o_tile_bytes = 2 * (sum(tb * pad[l + 1] * 2 for l in range(num_layers - 1))
                            + tb * pad[-1] * 4)
    else:
        o_tile_bytes = 2 * tb * pad[-1] * 4
    live_act_bytes = tb * max(pad) * 4
    vmem_estimate = w_bytes + b_bytes + x_tile_bytes + o_tile_bytes + live_act_bytes
    vmem_limit = int(min(max(vmem_estimate * 3 // 2, 32 * 1024 * 1024),
                         96 * 1024 * 1024))

    flops = 2 * b_pad * sum(pad[l] * pad[l + 1] for l in range(num_layers))
    transcendentals = b_pad * pad[-1] if acts[-1] == "softmax" else 0
    if emit_all:
        out_hbm_bytes = sum(b_pad * pad[l + 1] * (2 if l < num_layers - 1 else 4)
                            for l in range(num_layers))
    else:
        out_hbm_bytes = b_pad * pad[-1] * 4
    bytes_accessed = b_pad * pad[0] * 2 + w_bytes + b_bytes + out_hbm_bytes

    kernel = functools.partial(_mlp_fused_kernel, num_layers=num_layers,
                               acts=acts, emit_all=emit_all)

    results = pl.pallas_call(
        kernel,
        out_shape=out_shape,
        grid=(grid,),
        in_specs=in_specs,
        out_specs=out_specs,
        compiler_params=pltpu.CompilerParams(
            dimension_semantics=("parallel",),   # batch tiles -> both TCs on v7x
            vmem_limit_bytes=vmem_limit),
        cost_estimate=pl.CostEstimate(flops=flops,
                                      transcendentals=transcendentals,
                                      bytes_accessed=bytes_accessed),
    )(*operands)

    if emit_all:
        all_outs = [results[l][:B, :sizes[l + 1]].astype(jnp.float32)
                    for l in range(num_layers)]
        out = all_outs[-1]
    else:
        out = results[:B, :sizes[-1]]

    if out.shape[-1] == 1:
        # torch.squeeze removes ALL size-1 dims (incl. the batch dim when B==1).
        out = jnp.squeeze(out)

    if emit_all:
        return out, all_outs
    return out


# ---------------------------------- main ----------------------------------------

if __name__ == "__main__":
    key = jax.random.PRNGKey(0)
    sizes = (16, 32, 32, 8)          # N-layer MLP: 16 -> 32 -> 32 -> 8
    batch = 8

    kp, kx = jax.random.split(key)
    params = init_params(kp, sizes)
    wts, bs = prepare_params(params, last_act="softmax")   # transpose+pad+bf16 once
    x = jax.random.normal(kx, (batch, sizes[0]), jnp.float32)

    out = n_layer_perceptron(wts, bs, x, sizes=sizes, last_act="softmax")
    out = jax.block_until_ready(out)

    # Reference in plain f32 JAX (same math, no Pallas).
    ref = x
    for i, (w, b) in enumerate(params):
        ref = ref @ w.T + b
        if i < len(params) - 1:
            ref = jnp.maximum(ref, 0.0)
        else:
            ref = jax.nn.softmax(ref, axis=-1)

    assert out.shape == (batch, sizes[-1])
    # bf16 MXU inputs + approximate (EUP) softmax reciprocal -> loosened tolerance.
    assert jnp.allclose(out, ref, atol=1e-2, rtol=1e-2), \
        float(jnp.max(jnp.abs(out - ref)))
    assert jnp.allclose(jnp.sum(out, axis=-1), 1.0, atol=1e-2)

    # return_all_activations path.
    out2, acts_all = n_layer_perceptron(
        wts, bs, x, sizes=sizes, last_act="softmax", return_all_activations=True)
    jax.block_until_ready(out2)
    assert len(acts_all) == len(sizes) - 1
    assert acts_all[0].shape == (batch, sizes[1])
    assert acts_all[-1].shape == (batch, sizes[-1])
    assert jnp.allclose(out2, out, atol=1e-5)

    print("KERNEL_OK")
</pallas_src>

<mosaic_0001>
module attributes {stable_mosaic.version = 11 : i64} {
  func.func @_mlp_fused_kernel(%arg0: i32, %arg1: memref<16x128xbf16, #tpu.memory_space<vmem>>, %arg2: memref<128x128xbf16, #tpu.memory_space<vmem>>, %arg3: memref<1x128xf32, #tpu.memory_space<vmem>>, %arg4: memref<128x128xbf16, #tpu.memory_space<vmem>>, %arg5: memref<1x128xf32, #tpu.memory_space<vmem>>, %arg6: memref<128x128xbf16, #tpu.memory_space<vmem>>, %arg7: memref<1x128xf32, #tpu.memory_space<vmem>>, %arg8: memref<16x128xf32, #tpu.memory_space<vmem>>) attributes {dimension_semantics = [#tpu.dimension_semantics<parallel>], iteration_bounds = array<i64: 1>, scalar_prefetch = 0 : i64, scratch_operands = 0 : i64, tpu.core_type = #tpu.core_type<tc>, window_params = [{transform_indices = @transform_0, window_bounds = array<i64: 16, 128>}, {pipeline_mode = #tpu.pipeline_mode<synchronous>, transform_indices = @transform_1, window_bounds = array<i64: 128, 128>}, {pipeline_mode = #tpu.pipeline_mode<synchronous>, transform_indices = @transform_2, window_bounds = array<i64: 1, 128>}, {pipeline_mode = #tpu.pipeline_mode<synchronous>, transform_indices = @transform_3, window_bounds = array<i64: 128, 128>}, {pipeline_mode = #tpu.pipeline_mode<synchronous>, transform_indices = @transform_4, window_bounds = array<i64: 1, 128>}, {pipeline_mode = #tpu.pipeline_mode<synchronous>, transform_indices = @transform_5, window_bounds = array<i64: 128, 128>}, {pipeline_mode = #tpu.pipeline_mode<synchronous>, transform_indices = @transform_6, window_bounds = array<i64: 1, 128>}, {transform_indices = @transform_7, window_bounds = array<i64: 16, 128>}]} {
    %c0 = arith.constant 0 : index
    %c0_0 = arith.constant 0 : index
    %0 = vector.load %arg1[%c0, %c0_0] : memref<16x128xbf16, #tpu.memory_space<vmem>>, vector<16x128xbf16>
    %c0_1 = arith.constant 0 : index
    %c0_2 = arith.constant 0 : index
    %1 = vector.load %arg2[%c0_1, %c0_2] : memref<128x128xbf16, #tpu.memory_space<vmem>>, vector<128x128xbf16>
    %cst = arith.constant dense<0.000000e+00> : vector<16x128xf32>
    %2 = tpu.matmul %0, %1, %cst {dimension_numbers = #tpu.dot_dimension_numbers<[1], [0], [0], [1], [0, 0, 1, 1], [], []>} : vector<16x128xbf16>, vector<128x128xbf16>, vector<16x128xf32> -> vector<16x128xf32>
    %c0_3 = arith.constant 0 : index
    %c0_4 = arith.constant 0 : index
    %3 = vector.load %arg3[%c0_3, %c0_4] : memref<1x128xf32, #tpu.memory_space<vmem>>, vector<1x128xf32>
    %4 = vector.broadcast %3 : vector<1x128xf32> to vector<16x128xf32>
    %5 = arith.addf %2, %4 : vector<16x128xf32>
    %cst_5 = arith.constant 0.000000e+00 : f32
    %6 = vector.broadcast %cst_5 : f32 to vector<16x128xf32>
    %7 = arith.maximumf %5, %6 : vector<16x128xf32>
    %8 = arith.truncf %7 : vector<16x128xf32> to vector<16x128xbf16>
    %c0_6 = arith.constant 0 : index
    %c0_7 = arith.constant 0 : index
    %9 = vector.load %arg4[%c0_6, %c0_7] : memref<128x128xbf16, #tpu.memory_space<vmem>>, vector<128x128xbf16>
    %cst_8 = arith.constant dense<0.000000e+00> : vector<16x128xf32>
    %10 = tpu.matmul %8, %9, %cst_8 {dimension_numbers = #tpu.dot_dimension_numbers<[1], [0], [0], [1], [0, 0, 1, 1], [], []>} : vector<16x128xbf16>, vector<128x128xbf16>, vector<16x128xf32> -> vector<16x128xf32>
    %c0_9 = arith.constant 0 : index
    %c0_10 = arith.constant 0 : index
    %11 = vector.load %arg5[%c0_9, %c0_10] : memref<1x128xf32, #tpu.memory_space<vmem>>, vector<1x128xf32>
    %12 = vector.broadcast %11 : vector<1x128xf32> to vector<16x128xf32>
    %13 = arith.addf %10, %12 : vector<16x128xf32>
    %cst_11 = arith.constant 0.000000e+00 : f32
    %14 = vector.broadcast %cst_11 : f32 to vector<16x128xf32>
    %15 = arith.maximumf %13, %14 : vector<16x128xf32>
    %16 = arith.truncf %15 : vector<16x128xf32> to vector<16x128xbf16>
    %c0_12 = arith.constant 0 : index
    %c0_13 = arith.constant 0 : index
    %17 = vector.load %arg6[%c0_12, %c0_13] : memref<128x128xbf16, #tpu.memory_space<vmem>>, vector<128x128xbf16>
    %cst_14 = arith.constant dense<0.000000e+00> : vector<16x128xf32>
    %18 = tpu.matmul %16, %17, %cst_14 {dimension_numbers = #tpu.dot_dimension_numbers<[1], [0], [0], [1], [0, 0, 1, 1], [], []>} : vector<16x128xbf16>, vector<128x128xbf16>, vector<16x128xf32> -> vector<16x128xf32>
    %c0_15 = arith.constant 0 : index
    %c0_16 = arith.constant 0 : index
    %19 = vector.load %arg7[%c0_15, %c0_16] : memref<1x128xf32, #tpu.memory_space<vmem>>, vector<1x128xf32>
    %20 = vector.broadcast %19 : vector<1x128xf32> to vector<16x128xf32>
    %21 = arith.addf %18, %20 : vector<16x128xf32>
    %cst_17 = arith.constant dense<0xFF800000> : vector<16xf32>
    %22 = vector.multi_reduction <maximumf>, %21, %cst_17 [1] : vector<16x128xf32> to vector<16xf32>
    %23 = vector.shape_cast %22 : vector<16xf32> to vector<16x1xf32>
    %24 = vector.broadcast %23 : vector<16x1xf32> to vector<16x128xf32>
    %25 = arith.subf %21, %24 : vector<16x128xf32>
    %26 = math.exp %25 : vector<16x128xf32>
    %cst_18 = arith.constant dense<0.000000e+00> : vector<16xf32>
    %27 = vector.multi_reduction <add>, %26, %cst_18 [1] : vector<16x128xf32> to vector<16xf32>
    %28 = vector.shape_cast %27 : vector<16xf32> to vector<16x1xf32>
    %29 = tpu.reciprocal %28 {approx = true} : vector<16x1xf32> -> vector<16x1xf32>
    %30 = vector.broadcast %29 : vector<16x1xf32> to vector<16x128xf32>
    %31 = arith.mulf %26, %30 : vector<16x128xf32>
    %c0_19 = arith.constant 0 : index
    %c0_20 = arith.constant 0 : index
    %32 = vector.load %arg8[%c0_19, %c0_20] : memref<16x128xf32, #tpu.memory_space<vmem>>, vector<16x128xf32>
    tpu.vector_store %arg8[%c0_19, %c0_20], %31 {strides = array<i32>} : memref<16x128xf32, #tpu.memory_space<vmem>>, vector<16x128xf32>,
    return
  }
  func.func @transform_0(%arg0: i32) -> (i32, i32) {
    %c0_i32 = arith.constant 0 : i32
    %c0_i32_0 = arith.constant 0 : i32
    return %arg0, %c0_i32 : i32, i32
  }
  func.func @transform_1(%arg0: i32) -> (i32, i32) {
    %c0_i32 = arith.constant 0 : i32
    %c0_i32_0 = arith.constant 0 : i32
    %c0_i32_1 = arith.constant 0 : i32
    return %c0_i32, %c0_i32_0 : i32, i32
  }
  func.func @transform_2(%arg0: i32) -> (i32, i32) {
    %c0_i32 = arith.constant 0 : i32
    %c0_i32_0 = arith.constant 0 : i32
    %c0_i32_1 = arith.constant 0 : i32
    return %c0_i32, %c0_i32_0 : i32, i32
  }
  func.func @transform_3(%arg0: i32) -> (i32, i32) {
    %c0_i32 = arith.constant 0 : i32
    %c0_i32_0 = arith.constant 0 : i32
    %c0_i32_1 = arith.constant 0 : i32
    return %c0_i32, %c0_i32_0 : i32, i32
  }
  func.func @transform_4(%arg0: i32) -> (i32, i32) {
    %c0_i32 = arith.constant 0 : i32
    %c0_i32_0 = arith.constant 0 : i32
    %c0_i32_1 = arith.constant 0 : i32
    return %c0_i32, %c0_i32_0 : i32, i32
  }
  func.func @transform_5(%arg0: i32) -> (i32, i32) {
    %c0_i32 = arith.constant 0 : i32
    %c0_i32_0 = arith.constant 0 : i32
    %c0_i32_1 = arith.constant 0 : i32
    return %c0_i32, %c0_i32_0 : i32, i32
  }
  func.func @transform_6(%arg0: i32) -> (i32, i32) {
    %c0_i32 = arith.constant 0 : i32
    %c0_i32_0 = arith.constant 0 : i32
    %c0_i32_1 = arith.constant 0 : i32
    return %c0_i32, %c0_i32_0 : i32, i32
  }
  func.func @transform_7(%arg0: i32) -> (i32, i32) {
    %c0_i32 = arith.constant 0 : i32
    %c0_i32_0 = arith.constant 0 : i32
    return %arg0, %c0_i32 : i32, i32
  }
}

</mosaic_0001>

<bundles_post_ra>
// kernel: n_layer_perceptron.1
= control target key start
LH: loop header
LB: loop body
LE: loop exit
PB: predicated region body
PF: predicated region fallthrough
CT: control target
= control target key end

     0   :  { %12 = vsyncpa [#allocation3], 0  ;;  %s648_s0 = inlined_call_operand.vmem [shape: bf16[16,128], index: 0, kind: input, shape index: {}]   ;;  %s649_s1 = inlined_call_operand.hbm [shape: bf16[128,128], index: 1, kind: input, shape index: {}]   ;;  %s650_s2 = inlined_call_operand.vmem [shape: f32[1,128], index: 2, kind: input, shape index: {}]   ;;  %s651_s3 = inlined_call_operand.hbm [shape: bf16[128,128], index: 3, kind: input, shape index: {}]   ;;  %s652_s4 = inlined_call_operand.vmem [shape: f32[1,128], index: 4, kind: input, shape index: {}]   ;;  %s653_s5 = inlined_call_operand.hbm [shape: bf16[128,128], index: 5, kind: input, shape index: {}]   ;;  %s654_s6 = inlined_call_operand.vmem [shape: f32[1,128], index: 6, kind: input, shape index: {}]   ;;  %s655_s7 = inlined_call_operand.vmem [shape: f32[16,128], index: 7, kind: output, shape index: {}]  }
   0x1   :  { %13 = vsyncpa [#allocation5], 0  ;;  %s35_s26 = sshll.u32 %s651_s3, 4  ;;  %s576_s27 = smov [#allocation4]   ;;  %s36_s26 = int_to_ptr.hbm [resolvable:$true] %s35_s26 }
   0x2   :  { %s37_s28 = sshll.u32 %s576_s27, 4  ;;  %s20_s8 = sshll.u32 %s649_s1, 4  ;;  %s38_s28 = int_to_ptr.vmem [resolvable:$true] %s37_s28  ;;  %s21_s8 = int_to_ptr.hbm [resolvable:$true] %s20_s8 }
   0x3   :  { %s577_s9 = smov 64   ;;  %s578_s10 = smov 4  }
   0x4   :  { %43 = dma.hbm_to_vmem [thread:$0]  %s36_s26, 1024, %s38_s28, [#allocation5], %s577_s9, %s577_s9, %s578_s10  }
   0x5   :  { %s579_s11 = smov [#allocation2]   ;;  %s50_s15 = sshll.u32 %s653_s5, 4  ;;  %s51_s15 = int_to_ptr.hbm [resolvable:$true] %s50_s15 }
   0x6   :  { %s22_s12 = sshll.u32 %s579_s11, 4  ;;  %s580_s3 = smov [#allocation6]   ;;  %s23_s12 = int_to_ptr.vmem [resolvable:$true] %s22_s12 }
   0x7   :  { %28 = dma.hbm_to_vmem [thread:$0]  %s21_s8, 1024, %s23_s12, [#allocation3], %s577_s9, %s577_s9, %s578_s10  }
   0x8   :  { %s52_s16 = sshll.u32 %s580_s3, 4  ;;  %s53_s16 = int_to_ptr.vmem [resolvable:$true] %s52_s16 }
   0x9   :  { %58 = dma.hbm_to_vmem [thread:$0]  %s51_s15, 1024, %s53_s16, [#allocation5], %s577_s9, %s577_s9, %s578_s10  }
   0xa   :  { %572 = dma.done.wait [#allocation3], 1024  }
   0xb   :  { %573 = vsyncadd [#allocation3], 4294966272 }
   0xc   :  { %574 = dma.done.wait [#allocation5], 2048  }
   0xd   :  { %575 = vsyncadd [#allocation5], 4294965248  ;;  %v467_v0 = vld [vmem:[#allocation2 + $0x38] sm:$0xff]  ;;  %v466_v1 = vld [vmem:[#allocation2 + $0x30] sm:$0xff] }
   0xe   :  { %149 = vmatpush.bf16.msra.mxu0 %v467_v0  ;;  %v475_v2 = vld [vmem:[#allocation4 + $0x38] sm:$0xff]  ;;  %v474_v3 = vld [vmem:[#allocation4 + $0x30] sm:$0xff]  ;;  %v465_v4 = vld [vmem:[#allocation2 + $0x28] sm:$0xff] }
   0xf   :  { %234 = vmatpush.bf16.msra.mxu1 %v475_v2  ;;  %v473_v5 = vld [vmem:[#allocation4 + $0x28] sm:$0xff]  ;;  %v464_v6 = vld [vmem:[#allocation2 + $0x20] sm:$0xff]  ;;  %v463_v8 = vld [vmem:[#allocation2 + $0x18] sm:$0xff] }
  0x10   :  { %v472_v7 = vld [vmem:[#allocation4 + $0x20] sm:$0xff]  ;;  %v462_v9 = vld [vmem:[#allocation2 + $0x10] sm:$0xff]  ;;  %v461_v10 = vld [vmem:[#allocation2 + $0x8] sm:$0xff] }
  0x11   :  { %v460_v11 = vld [vmem:[#allocation2] sm:$0xff]  ;;  %v471_v13 = vld [vmem:[#allocation4 + $0x18] sm:$0xff]  ;;  %v470_v14 = vld [vmem:[#allocation4 + $0x10] sm:$0xff] }
  0x12   :  { %150 = vmatpush.bf16.msra.mxu0 %v466_v1  ;;  %v459_v12 = vld [vmem:[%s648_s0] sm:$0xff]  ;;  %v469_v15 = vld [vmem:[#allocation4 + $0x8] sm:$0xff]  ;;  %v483_v17 = vld [vmem:[#allocation6 + $0x38] sm:$0xff] }
  0x13   :  { %235 = vmatpush.bf16.msra.mxu1 %v474_v3  ;;  %v468_v16 = vld [vmem:[#allocation4] sm:$0xff]  ;;  %319 = vmatpush.bf16.msra.mxu2 %v483_v17  ;;  %v482_v18 = vld [vmem:[#allocation6 + $0x30] sm:$0xff]  ;;  %v481_v19 = vld [vmem:[#allocation6 + $0x28] sm:$0xff] }
  0x14   :  { %v480_v20 = vld [vmem:[#allocation6 + $0x20] sm:$0xff]  ;;  %v479_v29 = vld [vmem:[#allocation6 + $0x18] sm:$0xff]  ;;  %v478_v30 = vld [vmem:[#allocation6 + $0x10] sm:$0xff] }
  0x15   :  { %v489_v22 = vld [vmem:[%s650_s2] ss:$0 sm:$0xff]  ;;  %v477_v31 = vld [vmem:[#allocation6 + $0x8] sm:$0xff] }
  0x16   :  { %151 = vmatpush.bf16.msra.mxu0 %v465_v4  ;;  %v476_v32 = vld [vmem:[#allocation6] sm:$0xff] }
  0x17   :  { %236 = vmatpush.bf16.msra.mxu1 %v473_v5  ;;  %320 = vmatpush.bf16.msra.mxu2 %v482_v18  ;;  %v490_v34 = vld [vmem:[%s652_s4] ss:$0 sm:$0xff] }
  0x18   :  { %v491_v41 = vld [vmem:[%s654_s6] ss:$0 sm:$0xff] }
  0x1a   :  { %152 = vmatpush.bf16.msra.mxu0 %v464_v6 }
  0x1b   :  { %237 = vmatpush.bf16.msra.mxu1 %v472_v7  ;;  %321 = vmatpush.bf16.msra.mxu2 %v481_v19 }
  0x1e   :  { %153 = vmatpush.bf16.msra.mxu0 %v463_v8 }
  0x1f   :  { %238 = vmatpush.bf16.msra.mxu1 %v471_v13  ;;  %322 = vmatpush.bf16.msra.mxu2 %v480_v20 }
  0x22   :  { %154 = vmatpush.bf16.msra.mxu0 %v462_v9 }
  0x23   :  { %239 = vmatpush.bf16.msra.mxu1 %v470_v14  ;;  %323 = vmatpush.bf16.msra.mxu2 %v479_v29 }
  0x26   :  { %155 = vmatpush.bf16.msra.mxu0 %v461_v10 }
  0x27   :  { %240 = vmatpush.bf16.msra.mxu1 %v469_v15  ;;  %324 = vmatpush.bf16.msra.mxu2 %v478_v30 }
  0x2a   :  { %156 = vmatpush.bf16.msra.mxu0 %v460_v11 }
  0x2b   :  { %241 = vmatpush.bf16.msra.mxu1 %v468_v16  ;;  %325 = vmatpush.bf16.msra.mxu2 %v477_v31 }
  0x2d   :  { %157 = vmatmul.bf16.vlgmr.msra.gmra.mxu0 %v459_v12 }
  0x2f   :  { %326 = vmatpush.bf16.msra.mxu2 %v476_v32 }
  0xaa   :  { %v158_v21 = vpop.f32.mrf.mxu0 }
  0xab   :  { %v159_v23 = vadd.f32 %v489_v22, %v158_v21 }
  0xad   :  { %v163_v26 = vmax.f32 %v159_v23, 0.0 }
  0xb2   :  { %v160_v24 = vpop.f32.mrf.mxu0 }
  0xb3   :  { %v161_v25 = vadd.f32 %v489_v22, %v160_v24 }
  0xb5   :  { %v164_v27 = vmax.f32 %v161_v25, 0.0 }
  0xb7   :  { %v165_v28 = vpack.c.bf16 %v164_v27, %v163_v26 }
  0xb9   :  { %242 = vmatmul.bf16.vlgmr.msra.gmra.mxu1 %v165_v28 }
 0x136   :  { %v243_v33 = vpop.f32.mrf.mxu1 }
 0x137   :  { %v244_v35 = vadd.f32 %v490_v34, %v243_v33 }
 0x139   :  { %v248_v38 = vmax.f32 %v244_v35, 0.0 }
 0x13e   :  { %v245_v36 = vpop.f32.mrf.mxu1 }
 0x13f   :  { %v246_v37 = vadd.f32 %v490_v34, %v245_v36 }
 0x141   :  { %v249_v39 = vmax.f32 %v246_v37, 0.0 }
 0x143   :  { %v250_v40 = vpack.c.bf16 %v249_v39, %v248_v38 }
 0x145   :  { %327 = vmatmul.bf16.vlgmr.msra.gmra.mxu2 %v250_v40 }
 0x1c8   :  { %v328_v42 = vpop.f32.mrf.mxu2 }
 0x1c9   :  { %v329_v43 = vadd.f32 %v491_v41, %v328_v42 }
 0x1cb   :  { %333 = vmax.xlane.f32.xlu0 %v329_v43 }
 0x1d0   :  { %v330_v44 = vpop.f32.mrf.mxu2 }
 0x1d1   :  { %v331_v45 = vadd.f32 %v491_v41, %v330_v44 }
 0x1d3   :  { %335 = vmax.xlane.f32.xlu0 %v331_v45 }
 0x23e   :  { %v334_v46 = vpop.xlane.xlu0 %333 }
 0x23f   :  { %v337_v47 = vsub.f32 %v329_v43, %v334_v46 }
 0x241   :  { %v339_v48 = vmul.f32 1.442695, %v337_v47 }
 0x243   :  { %492 = vpow2.f32 %v339_v48 }
 0x246   :  { %v336_v49 = vpop.xlane.xlu0 %335 }
 0x247   :  { %v338_v50 = vsub.f32 %v331_v45, %v336_v49 }
 0x249   :  { %v493_v51 = vpop.eup %492  ;;  %v341_v52 = vmul.f32 1.442695, %v338_v50 }
 0x24a   :  { %343 = vadd.xlane.f32.xlu1 %v493_v51 }
 0x24b   :  { %494 = vpow2.f32 %v341_v52 }
 0x251   :  { %v495_v53 = vpop.eup %494 }
 0x252   :  { %345 = vadd.xlane.f32.xlu1 %v495_v53 }
 0x2bd   :  { %v344_v54 = vpop.xlane.xlu1 %343 }
 0x2be   :  { %496 = vrcp.f32 %v344_v54 }
 0x2c4   :  { %v497_v55 = vpop.eup %496 }
 0x2c5   :  { %v349_v56 = vmul.f32 %v497_v55, %v493_v51  ;;  %v346_v57 = vpop.xlane.xlu1 %345 }
 0x2c6   :  { %498 = vrcp.f32 %v346_v57 }
 0x2c7   :  { %351 = vst [vmem:[%s655_s7] sm:$0xff] %v349_v56 }
 0x2cc   :  { %v499_v58 = vpop.eup %498 }
 0x2cd   :  { %v350_v59 = vmul.f32 %v499_v58, %v495_v53 }
 0x2cf   :  { %352 = vst [vmem:[%s655_s7 + $0x8] sm:$0xff] %v350_v59 }
 0x2d0   :  { %357 = vsyncpa [#allocation3], 1 }
 0x2d1   :  { %358 = vsyncpa [#allocation5], 1 }

</bundles_post_ra>
